<compile_context>
chip_gen: v7x
topology: tpu7x:2x2x1
jax: 0.10.0
libtpu: 0.0.40
codegen_flags: <defaults>
</compile_context>

<pallas_src>
import functools

import jax
import jax.numpy as jnp
from jax import lax
from jax.experimental import pallas as pl
from jax.experimental.pallas import tpu as pltpu

_BN_EPS = 1e-5
_VMEM_REQUEST = 48 * 1024 * 1024   # safe on v7x (64 MiB) and v5e/v6e (128 MiB)


def _s2v_stats_kernel(x_ref, w_ref, sum_ref, sq_ref, *,
                      w_total, tw, needs_mask, use_bf16):
    # x_ref: (C, tw) native-layout tile (channels on sublanes, W on lanes)
    # w_ref: (C, C) PyTorch Linear weight, layout (out_features, in_features)
    # sum_ref / sq_ref: (C, 1) per-batch accumulators (resident across W axis)
    @pl.when(pl.program_id(1) == 0)
    def _():
        sum_ref[...] = jnp.zeros_like(sum_ref)
        sq_ref[...] = jnp.zeros_like(sq_ref)

    x = x_ref[...]
    lhs = w_ref[...]
    if use_bf16:
        lhs = lhs.astype(jnp.bfloat16)
        x_mm = x.astype(jnp.bfloat16)
    else:
        x_mm = x

    # y[o, t] = sum_i W[o, i] * x[i, t]   (Linear, no bias) -> MXU
    y = lax.dot_general(
        lhs, x_mm,
        dimension_numbers=(((1,), (0,)), ((), ())),
        preferred_element_type=jnp.float32,
    )  # (C, tw)

    if needs_mask:
        # Ragged last tile: lanes beyond the real W hold garbage -> zero them
        # before accumulating (select also neutralizes any NaN garbage).
        rem = w_total - pl.program_id(1) * tw
        lane = lax.broadcasted_iota(jnp.int32, y.shape, 1)
        y = jnp.where(lane < rem, y, 0.0)

    sum_ref[...] += jnp.sum(y, axis=1, keepdims=True)
    sq_ref[...] += jnp.sum(y * y, axis=1, keepdims=True)


def _s2v_apply_kernel(x_ref, w_ref, sum_ref, sq_ref, gamma_ref, beta_ref,
                      out_ref, *, count, use_bf16):
    # Fold BN stats into per-channel scale/shift in-kernel (C-sized work,
    # rsqrt goes to the EUP slot -> essentially free vs. the MXU matmul).
    inv_n = 1.0 / count
    s = jnp.sum(sum_ref[...], axis=0)      # (C, 1)
    sq = jnp.sum(sq_ref[...], axis=0)      # (C, 1)
    mean = s * inv_n
    var = jnp.maximum(sq * inv_n - mean * mean, 0.0)   # clamp cancellation
    inv = lax.rsqrt(var + _BN_EPS)
    scale = gamma_ref[...] * inv
    shift = beta_ref[...] - mean * scale

    x = x_ref[...]
    lhs = w_ref[...]
    if use_bf16:
        lhs = lhs.astype(jnp.bfloat16)
        x_mm = x.astype(jnp.bfloat16)
    else:
        x_mm = x

    y = lax.dot_general(
        lhs, x_mm,
        dimension_numbers=(((1,), (0,)), ((), ())),
        preferred_element_type=jnp.float32,
    )  # (C, tw)

    att = jnp.maximum(y * scale + shift, 0.0)
    out_ref[...] = (x * att).astype(out_ref.dtype)


def s2v_adaptor(semantic, lin_weight, bn_gamma, bn_beta, *,
                tw=None, use_bf16_matmul=False):
    """semantic: (B, C, 1, W) float32 (NCHW with H == 1)."""
    B, C, H, W = semantic.shape
    assert H == 1, "S2VAdaptor expects H == 1 (squeeze(2) in the PyTorch forward)"

    # Free reshapes only — data stays in native NCHW order.
    x = semantic.reshape(B, C, W).astype(jnp.float32)
    w = lin_weight.astype(jnp.float32)
    gamma = bn_gamma.reshape(C, 1).astype(jnp.float32)
    beta = bn_beta.reshape(C, 1).astype(jnp.float32)

    # Tile width along W: as large as fits the VMEM request once the
    # double-buffered in + out blocks (pass 2) and the double-buffered (C, C)
    # weight are accounted for.
    if tw is None:
        weight_bytes = 2 * C * C * 4
        slack = 2 * 1024 * 1024
        budget = max(_VMEM_REQUEST - weight_bytes - slack, 0)
        tw = budget // (4 * C * 4)          # 4 f32 (C, tw) buffers in pass 2
        tw = max(128, min(32768, (tw // 128) * 128))

    if W <= tw:
        tw = W                 # single tile: block == full W dim (always legal)
        n_w = 1
        needs_mask = False
    else:
        assert tw % 128 == 0, "tile width must be a multiple of 128 when tiling W"
        n_w = pl.cdiv(W, tw)
        needs_mask = (W % tw) != 0

    cp_stats = pltpu.CompilerParams(
        dimension_semantics=("parallel", "arbitrary"),
        vmem_limit_bytes=_VMEM_REQUEST)
    cp_apply = pltpu.CompilerParams(
        dimension_semantics=("parallel", "parallel"),
        vmem_limit_bytes=_VMEM_REQUEST)

    # ---------------- pass 1: streaming per-batch BN statistics ----------------
    stats_kernel = functools.partial(
        _s2v_stats_kernel, w_total=W, tw=tw,
        needs_mask=needs_mask, use_bf16=use_bf16_matmul)

    sum_b, sq_b = pl.pallas_call(
        stats_kernel,
        out_shape=(jax.ShapeDtypeStruct((B, C, 1), jnp.float32),
                   jax.ShapeDtypeStruct((B, C, 1), jnp.float32)),
        grid_spec=pl.GridSpec(
            grid=(B, n_w),
            in_specs=[
                pl.BlockSpec((None, C, tw), lambda b, t: (b, 0, t)),
                pl.BlockSpec((C, C), lambda b, t: (0, 0)),
            ],
            out_specs=[
                pl.BlockSpec((None, C, 1), lambda b, t: (b, 0, 0)),
                pl.BlockSpec((None, C, 1), lambda b, t: (b, 0, 0)),
            ],
        ),
        compiler_params=cp_stats,
    )(x, w)

    # ---------------- pass 2: finalize BN + normalize, ReLU, modulate ----------
    apply_kernel = functools.partial(
        _s2v_apply_kernel, count=float(B * W), use_bf16=use_bf16_matmul)

    out = pl.pallas_call(
        apply_kernel,
        out_shape=jax.ShapeDtypeStruct((B, C, W), jnp.float32),
        grid_spec=pl.GridSpec(
            grid=(B, n_w),
            in_specs=[
                pl.BlockSpec((None, C, tw), lambda b, t: (b, 0, t)),
                pl.BlockSpec((C, C), lambda b, t: (0, 0)),
                pl.BlockSpec((B, C, 1), lambda b, t: (0, 0, 0)),
                pl.BlockSpec((B, C, 1), lambda b, t: (0, 0, 0)),
                pl.BlockSpec((C, 1), lambda b, t: (0, 0)),
                pl.BlockSpec((C, 1), lambda b, t: (0, 0)),
            ],
            out_specs=pl.BlockSpec((None, C, tw), lambda b, t: (b, 0, t)),
        ),
        compiler_params=cp_apply,
    )(x, w, sum_b, sq_b, gamma, beta)

    return out.reshape(B, C, 1, W)


def _reference(semantic, lin_weight, bn_gamma, bn_beta):
    """Pure-JAX reference mirroring the PyTorch forward (training-mode BN)."""
    B, C, H, W = semantic.shape
    x = jnp.transpose(semantic[:, :, 0, :], (0, 2, 1))           # (B, W, C)
    y = jnp.einsum("bwc,oc->bwo", x, lin_weight)                 # Linear
    y = jnp.transpose(y, (0, 2, 1))                              # (B, C, W)
    mean = jnp.mean(y, axis=(0, 2), keepdims=True)
    var = jnp.mean((y - mean) ** 2, axis=(0, 2), keepdims=True)
    bn = (y - mean) / jnp.sqrt(var + _BN_EPS)
    bn = bn * bn_gamma.reshape(1, C, 1) + bn_beta.reshape(1, C, 1)
    act = jnp.maximum(bn, 0.0)
    return semantic * act[:, :, None, :]


if __name__ == "__main__":
    key = jax.random.PRNGKey(0)
    k_sem, k_w, k_g, k_b = jax.random.split(key, 4)

    # Case 1: small shape consistent with the module's (B, C, 1, W) input.
    B, C, W = 2, 32, 8
    semantic = jax.random.normal(k_sem, (B, C, 1, W), dtype=jnp.float32)
    lin_weight = 0.05 * jax.random.normal(k_w, (C, C), dtype=jnp.float32)
    bn_gamma = 1.0 + 0.1 * jax.random.normal(k_g, (C,), dtype=jnp.float32)
    bn_beta = 0.1 * jax.random.normal(k_b, (C,), dtype=jnp.float32)

    out = jax.block_until_ready(s2v_adaptor(semantic, lin_weight, bn_gamma, bn_beta))
    ref = _reference(semantic, lin_weight, bn_gamma, bn_beta)
    assert out.shape == (B, C, 1, W)
    assert jnp.allclose(out, ref, atol=1e-4, rtol=1e-4), "mismatch vs reference (case 1)"

    # Case 2: exercises the multi-tile grid along W, the streaming per-batch
    # BN accumulation, and the ragged edge-tile mask (W=300, tw=128 -> 3 tiles,
    # last tile has 44 valid lanes). No padding / slicing anywhere.
    B2, C2, W2 = 2, 32, 300
    sem2 = jax.random.normal(k_sem, (B2, C2, 1, W2), dtype=jnp.float32)
    w2 = 0.05 * jax.random.normal(k_w, (C2, C2), dtype=jnp.float32)
    g2 = 1.0 + 0.1 * jax.random.normal(k_g, (C2,), dtype=jnp.float32)
    b2 = 0.1 * jax.random.normal(k_b, (C2,), dtype=jnp.float32)

    out2 = jax.block_until_ready(s2v_adaptor(sem2, w2, g2, b2, tw=128))
    ref2 = _reference(sem2, w2, g2, b2)
    assert out2.shape == (B2, C2, 1, W2)
    assert jnp.allclose(out2, ref2, atol=1e-4, rtol=1e-4), "mismatch vs reference (case 2)"

    # Case 3: smoke-test the optional bf16 MXU path (loose check: finite,
    # correct shape) — intended for large-C compute-bound regimes.
    out3 = jax.block_until_ready(
        s2v_adaptor(sem2, w2, g2, b2, tw=128, use_bf16_matmul=True))
    assert out3.shape == (B2, C2, 1, W2)
    assert bool(jnp.all(jnp.isfinite(out3))), "non-finite output (bf16 path)"

    print("KERNEL_OK")
</pallas_src>

<mosaic_0001>
module attributes {stable_mosaic.version = 11 : i64} {
  func.func @_s2v_stats_kernel(%arg0: i32, %arg1: i32, %arg2: memref<1x32x8xf32, #tpu.memory_space<vmem>>, %arg3: memref<32x32xf32, #tpu.memory_space<vmem>>, %arg4: memref<1x32x1xf32, #tpu.memory_space<vmem>>, %arg5: memref<1x32x1xf32, #tpu.memory_space<vmem>>) attributes {dimension_semantics = [#tpu.dimension_semantics<parallel>, #tpu.dimension_semantics<arbitrary>], iteration_bounds = array<i64: 2, 1>, scalar_prefetch = 0 : i64, scratch_operands = 0 : i64, tpu.core_type = #tpu.core_type<tc>, window_params = [{transform_indices = @transform_0, window_bounds = array<i64: 1, 32, 8>}, {pipeline_mode = #tpu.pipeline_mode<synchronous>, transform_indices = @transform_1, window_bounds = array<i64: 32, 32>}, {transform_indices = @transform_2, window_bounds = array<i64: 1, 32, 1>}, {transform_indices = @transform_3, window_bounds = array<i64: 1, 32, 1>}]} {
    %c0_i32 = arith.constant 0 : i32
    %0 = arith.cmpi eq, %arg1, %c0_i32 : i32
    %1 = arith.extui %0 : i1 to i32
    %c0_i32_0 = arith.constant 0 : i32
    %2 = arith.cmpi ne, %1, %c0_i32_0 : i32
    scf.if %2 {
      %cst_19 = arith.constant 0.000000e+00 : f32
      %24 = vector.broadcast %cst_19 : f32 to vector<32x1xf32>
      %c0_20 = arith.constant 0 : index
      %c0_21 = arith.constant 0 : index
      %c0_22 = arith.constant 0 : index
      %25 = vector.load %arg4[%c0_20, %c0_21, %c0_22] : memref<1x32x1xf32, #tpu.memory_space<vmem>>, vector<1x32x1xf32>
      %26 = vector.shape_cast %25 : vector<1x32x1xf32> to vector<32x1xf32>
      %27 = vector.shape_cast %24 : vector<32x1xf32> to vector<1x32x1xf32>
      tpu.vector_store %arg4[%c0_20, %c0_21, %c0_22], %27 {strides = array<i32>} : memref<1x32x1xf32, #tpu.memory_space<vmem>>, vector<1x32x1xf32>,
      %cst_23 = arith.constant 0.000000e+00 : f32
      %28 = vector.broadcast %cst_23 : f32 to vector<32x1xf32>
      %c0_24 = arith.constant 0 : index
      %c0_25 = arith.constant 0 : index
      %c0_26 = arith.constant 0 : index
      %29 = vector.load %arg5[%c0_24, %c0_25, %c0_26] : memref<1x32x1xf32, #tpu.memory_space<vmem>>, vector<1x32x1xf32>
      %30 = vector.shape_cast %29 : vector<1x32x1xf32> to vector<32x1xf32>
      %31 = vector.shape_cast %28 : vector<32x1xf32> to vector<1x32x1xf32>
      tpu.vector_store %arg5[%c0_24, %c0_25, %c0_26], %31 {strides = array<i32>} : memref<1x32x1xf32, #tpu.memory_space<vmem>>, vector<1x32x1xf32>,
    } else {
    }
    %c0 = arith.constant 0 : index
    %c0_1 = arith.constant 0 : index
    %c0_2 = arith.constant 0 : index
    %3 = vector.load %arg2[%c0, %c0_1, %c0_2] : memref<1x32x8xf32, #tpu.memory_space<vmem>>, vector<1x32x8xf32>
    %4 = vector.shape_cast %3 : vector<1x32x8xf32> to vector<32x8xf32>
    %c0_3 = arith.constant 0 : index
    %c0_4 = arith.constant 0 : index
    %5 = vector.load %arg3[%c0_3, %c0_4] : memref<32x32xf32, #tpu.memory_space<vmem>>, vector<32x32xf32>
    %cst = arith.constant dense<0.000000e+00> : vector<32x8xf32>
    %6 = tpu.matmul %5, %4, %cst {dimension_numbers = #tpu.dot_dimension_numbers<[1], [0], [0], [1], [0, 0, 1, 1], [], []>} : vector<32x32xf32>, vector<32x8xf32>, vector<32x8xf32> -> vector<32x8xf32>
    %c0_5 = arith.constant 0 : index
    %c0_6 = arith.constant 0 : index
    %c0_7 = arith.constant 0 : index
    %7 = vector.load %arg4[%c0_5, %c0_6, %c0_7] : memref<1x32x1xf32, #tpu.memory_space<vmem>>, vector<1x32x1xf32>
    %8 = vector.shape_cast %7 : vector<1x32x1xf32> to vector<32x1xf32>
    %cst_8 = arith.constant dense<0.000000e+00> : vector<32xf32>
    %9 = vector.multi_reduction <add>, %6, %cst_8 [1] : vector<32x8xf32> to vector<32xf32>
    %10 = vector.shape_cast %9 : vector<32xf32> to vector<32x1xf32>
    %11 = arith.addf %8, %10 : vector<32x1xf32>
    %c0_9 = arith.constant 0 : index
    %c0_10 = arith.constant 0 : index
    %c0_11 = arith.constant 0 : index
    %12 = vector.load %arg4[%c0_9, %c0_10, %c0_11] : memref<1x32x1xf32, #tpu.memory_space<vmem>>, vector<1x32x1xf32>
    %13 = vector.shape_cast %12 : vector<1x32x1xf32> to vector<32x1xf32>
    %14 = vector.shape_cast %11 : vector<32x1xf32> to vector<1x32x1xf32>
    tpu.vector_store %arg4[%c0_9, %c0_10, %c0_11], %14 {strides = array<i32>} : memref<1x32x1xf32, #tpu.memory_space<vmem>>, vector<1x32x1xf32>,
    %c0_12 = arith.constant 0 : index
    %c0_13 = arith.constant 0 : index
    %c0_14 = arith.constant 0 : index
    %15 = vector.load %arg5[%c0_12, %c0_13, %c0_14] : memref<1x32x1xf32, #tpu.memory_space<vmem>>, vector<1x32x1xf32>
    %16 = vector.shape_cast %15 : vector<1x32x1xf32> to vector<32x1xf32>
    %17 = arith.mulf %6, %6 : vector<32x8xf32>
    %cst_15 = arith.constant dense<0.000000e+00> : vector<32xf32>
    %18 = vector.multi_reduction <add>, %17, %cst_15 [1] : vector<32x8xf32> to vector<32xf32>
    %19 = vector.shape_cast %18 : vector<32xf32> to vector<32x1xf32>
    %20 = arith.addf %16, %19 : vector<32x1xf32>
    %c0_16 = arith.constant 0 : index
    %c0_17 = arith.constant 0 : index
    %c0_18 = arith.constant 0 : index
    %21 = vector.load %arg5[%c0_16, %c0_17, %c0_18] : memref<1x32x1xf32, #tpu.memory_space<vmem>>, vector<1x32x1xf32>
    %22 = vector.shape_cast %21 : vector<1x32x1xf32> to vector<32x1xf32>
    %23 = vector.shape_cast %20 : vector<32x1xf32> to vector<1x32x1xf32>
    tpu.vector_store %arg5[%c0_16, %c0_17, %c0_18], %23 {strides = array<i32>} : memref<1x32x1xf32, #tpu.memory_space<vmem>>, vector<1x32x1xf32>,
    return
  }
  func.func @transform_0(%arg0: i32, %arg1: i32) -> (i32, i32, i32) {
    %c0_i32 = arith.constant 0 : i32
    %c0_i32_0 = arith.constant 0 : i32
    return %arg0, %c0_i32, %arg1 : i32, i32, i32
  }
  func.func @transform_1(%arg0: i32, %arg1: i32) -> (i32, i32) {
    %c0_i32 = arith.constant 0 : i32
    %c0_i32_0 = arith.constant 0 : i32
    %c0_i32_1 = arith.constant 0 : i32
    return %c0_i32, %c0_i32_0 : i32, i32
  }
  func.func @transform_2(%arg0: i32, %arg1: i32) -> (i32, i32, i32) {
    %c0_i32 = arith.constant 0 : i32
    %c0_i32_0 = arith.constant 0 : i32
    %c0_i32_1 = arith.constant 0 : i32
    return %arg0, %c0_i32, %c0_i32_0 : i32, i32, i32
  }
  func.func @transform_3(%arg0: i32, %arg1: i32) -> (i32, i32, i32) {
    %c0_i32 = arith.constant 0 : i32
    %c0_i32_0 = arith.constant 0 : i32
    %c0_i32_1 = arith.constant 0 : i32
    return %arg0, %c0_i32, %c0_i32_0 : i32, i32, i32
  }
}

</mosaic_0001>

<bundles_post_ra>
// kernel: tpu_custom_call.1
= control target key start
LH: loop header
LB: loop body
LE: loop exit
PB: predicated region body
PF: predicated region fallthrough
CT: control target
= control target key end

     0   :  { %s606_s12 = smov 0   ;;  %s608_s13 = smov 0   ;;  %s710_s0 = inlined_call_operand.vmem [shape: f32[2,32,8], index: 0, kind: input, shape index: {}]   ;;  %s711_s1 = inlined_call_operand.vmem [shape: f32[32,32], index: 1, kind: input, shape index: {}]   ;;  %s712_s2 = inlined_call_operand.vmem [shape: f32[2,32,1], index: 2, kind: output, shape index: {0}]   ;;  %s713_s3 = inlined_call_operand.vmem [shape: f32[2,32,1], index: 3, kind: output, shape index: {1}]  }
   0x1   :  { %s610_s14 = smov 0  }
   0x2 LB: > { %s26_s15 = sadd.s32 1, %s579_s13  ;;  %p486_p0 = scmp.ge.s32.totalorder %s583_s14, 1  ;;  %s583_s14 = sphi %s610_s14, %s14_s14   ;;  %s579_s13 = sphi %s608_s13, %s715_s13   ;;  %s575_s12 = sphi %s606_s12, %s714_s12  }
   0x3   : > { %p28_p1 = scmp.ge.s32.totalorder %s26_s15, 2  ;;  %p157_p2 = scmp.lt.s32.totalorder %s583_s14, 3 }
   0x5   : > { %s717_s15 = smov (%p28_p1, %s26_s15), 0  ;;  %p158_p3 = pnand %p486_p0, %p157_p2 }
   0x6   : > { %p189_p4 = scmp.lt.s32.totalorder (!%p158_p3), %s575_s12, 1  ;;  %v224_v0 = vld [vmem:[%s711_s1] sm:$0xff] (!%p158_p3)  ;;  %vm228_vm0 = vcmask (!%p158_p3), 261120   ;;  %v226_v1 = vld [vmem:[%s711_s1 + $0x10] sm:$0xff] (!%p158_p3)  ;;  %v225_v8 = vld [vmem:[%s711_s1 + $0x8] sm:$0xff] (!%p158_p3)  ;;  %vm211_vm1 = vcmask (!%p158_p3), 7168  }
   0x7   : > { %161 = sbr.rel (%p158_p3) target bundleno = 398 (0x18e), region = 28  ;;  %518 = vmatprep.mubr.msk.f32.mxu0 (!%p158_p3), %vm228_vm0, %v224_v0  ;;  %521 = vmatprep.mubr.msk.f32.mxu1 (!%p158_p3), %vm228_vm0, %v226_v1  ;;  %v227_v9 = vld [vmem:[%s711_s1 + $0x18] sm:$0xff] (!%p158_p3)  ;;  %v585_v10 = vmov (!%p158_p3), 0.0   ;;  %vm330_vm2 = vcmask (!%p158_p3), 64512  }
   0xe   : > { %s719_s12 = smov (!%p189_p4, %s575_s12), 1 }
   0xf   : > { %s499_s20 = sshll.u32 %s719_s12, 5 }
  0x10   : > { %s196_s23 = scalar_lea.vmem %s710_s0, %s499_s20  ;;  %s646_s30 = scalar_lea.vmem %s712_s2, %s499_s20 }
  0x11   : > { %v220_v2 = vld [vmem:[%s196_s23] sm:$0xff]  ;;  %v221_v3 = vld [vmem:[%s196_s23 + $0x8] sm:$0xff]  ;;  %v222_v4 = vld [vmem:[%s196_s23 + $0x10] sm:$0xff]  ;;  %s651_s6 = scalar_lea.vmem %s713_s3, %s499_s20  ;;  %215 = vst.msk [vmem:[%s646_s30 + $0x18] sm:$0xff] %vm211_vm1, %v585_v10 }
  0x12   : > { %v524_v5 = vpack.c.bf16 %v221_v3, %v220_v2  ;;  %v223_v6 = vld [vmem:[%s196_s23 + $0x18] sm:$0xff]  ;;  %212 = vst.msk [vmem:[%s646_s30] sm:$0xff] %vm211_vm1, %v585_v10  ;;  %213 = vst.msk [vmem:[%s646_s30 + $0x8] sm:$0xff] %vm211_vm1, %v585_v10 }
  0x13   : > { %v528_v7 = vpack.c.bf16 %v223_v6, %v222_v4  ;;  %214 = vst.msk [vmem:[%s646_s30 + $0x10] sm:$0xff] %vm211_vm1, %v585_v10  ;;  %216 = vst.msk [vmem:[%s651_s6] sm:$0xff] %vm211_vm1, %v585_v10 }
  0x14   : > { %525 = vmatprep.subr.bf16.mxu0 %v524_v5  ;;  %532 = vmatprep.subr.bf16.mxu1 %v524_v5  ;;  %217 = vst.msk [vmem:[%s651_s6 + $0x8] sm:$0xff] %vm211_vm1, %v585_v10  ;;  %218 = vst.msk [vmem:[%s651_s6 + $0x10] sm:$0xff] %vm211_vm1, %v585_v10 }
  0x15   : > { %527 = vmatpush3.bf16.msra.mxu0 %v524_v5  ;;  %534 = vmatpush3.bf16.msra.mxu1 %v524_v5  ;;  %219 = vst.msk [vmem:[%s651_s6 + $0x18] sm:$0xff] %vm211_vm1, %v585_v10 }
  0x16   : > { %529 = vmatprep.subr.bf16.mxu0 %v528_v7  ;;  %533 = vmatprep.subr.bf16.mxu1 %v528_v7 }
  0x18   : > { %v329_v27 = vld [vmem:[%s646_s30 + $0x18] sm:$0xff] }
  0x19   : > { %531 = vmatpush3.bf16.msra.mxu0 %v528_v7  ;;  %535 = vmatpush3.bf16.msra.mxu1 %v528_v7  ;;  %v327_v28 = vld [vmem:[%s646_s30 + $0x8] sm:$0xff]  ;;  %v326_v34 = vld [vmem:[%s646_s30] sm:$0xff] }
  0x1a   : > { %v328_v33 = vld [vmem:[%s646_s30 + $0x10] sm:$0xff]  ;;  %v352_v40 = vld [vmem:[%s651_s6] sm:$0xff] }
  0x1b   : > { %v353_v39 = vld [vmem:[%s651_s6 + $0x8] sm:$0xff]  ;;  %v354_v46 = vld [vmem:[%s651_s6 + $0x10] sm:$0xff] }
  0x1c   : > { %519 = vmatmul.mubr.msk.f32.vlgmr.msra.gmra.mrb[0].mxu0 %vm228_vm0, %v225_v8  ;;  %522 = vmatmul.mubr.msk.f32.vlgmr.msra.gmra.mrb[0].mxu1 %vm228_vm0, %v227_v9  ;;  %v355_v45 = vld [vmem:[%s651_s6 + $0x18] sm:$0xff] }
  0xef   : > { %v520_v11 = vpop.f32.mrb[0].mxu0  ;;  %v523_v12 = vpop.f32.mrb[0].mxu1 }
  0xf0   : > { %v307_v13 = vpop.f32.mrb[1].mxu0  ;;  %v317_v14 = vpop.f32.mrb[1].mxu1  ;;  %v340_v15 = vsel %vm330_vm2, %v523_v12, 0.0  ;;  %v334_v16 = vsel %vm330_vm2, %v520_v11, 0.0  ;;  %v357_v17 = vmul.f32 %v520_v11, %v520_v11  ;;  %v359_v21 = vmul.f32 %v523_v12, %v523_v12 }
  0xf1   : > { %341 = vadd.xlane.f32.xlu1 %v340_v15  ;;  %335 = vadd.xlane.f32.xlu0 %v334_v16  ;;  %v356_v18 = vmul.f32 %v307_v13, %v307_v13  ;;  %v337_v19 = vsel %vm330_vm2, %v317_v14, 0.0  ;;  %v331_v20 = vsel %vm330_vm2, %v307_v13, 0.0  ;;  %v358_v22 = vmul.f32 %v317_v14, %v317_v14 }
  0xf2   : > { %v363_v23 = vsel %vm330_vm2, %v357_v17, 0.0  ;;  %v369_v25 = vsel %vm330_vm2, %v359_v21, 0.0 }
  0xf3   : > { %v360_v24 = vsel %vm330_vm2, %v356_v18, 0.0  ;;  %v366_v26 = vsel %vm330_vm2, %v358_v22, 0.0 }
  0xf5   : > { %338 = vadd.xlane.f32.xlu1 %v337_v19  ;;  %332 = vadd.xlane.f32.xlu0 %v331_v20 }
  0xf9   : > { %364 = vadd.xlane.f32.xlu1 %v363_v23  ;;  %361 = vadd.xlane.f32.xlu0 %v360_v24 }
  0xfd   : > { %370 = vadd.xlane.f32.xlu1 %v369_v25  ;;  %367 = vadd.xlane.f32.xlu0 %v366_v26 }
 0x17e   : > { %v342_v29 = vpop.xlane.xlu1 %341  ;;  %v336_v30 = vpop.xlane.xlu0 %335 }
 0x17f   : > { %v346_v31 = vadd.f32 %v342_v29, %v329_v27  ;;  %v344_v32 = vadd.f32 %v336_v30, %v327_v28 }
 0x181   : > { %351 = vst.msk [vmem:[%s646_s30 + $0x18] sm:$0xff] %vm211_vm1, %v346_v31  ;;  %349 = vst.msk [vmem:[%s646_s30 + $0x8] sm:$0xff] %vm211_vm1, %v344_v32 }
 0x182   : > { %v339_v35 = vpop.xlane.xlu1 %338  ;;  %v333_v36 = vpop.xlane.xlu0 %332 }
 0x183   : > { %v345_v37 = vadd.f32 %v339_v35, %v328_v33  ;;  %v343_v38 = vadd.f32 %v333_v36, %v326_v34 }
 0x185   : > { %350 = vst.msk [vmem:[%s646_s30 + $0x10] sm:$0xff] %vm211_vm1, %v345_v37  ;;  %348 = vst.msk [vmem:[%s646_s30] sm:$0xff] %vm211_vm1, %v343_v38 }
 0x186   : > { %v365_v41 = vpop.xlane.xlu1 %364  ;;  %v362_v42 = vpop.xlane.xlu0 %361 }
 0x187   : > { %v373_v43 = vadd.f32 %v365_v41, %v353_v39  ;;  %v372_v44 = vadd.f32 %v362_v42, %v352_v40 }
 0x189   : > { %377 = vst.msk [vmem:[%s651_s6 + $0x8] sm:$0xff] %vm211_vm1, %v373_v43  ;;  %376 = vst.msk [vmem:[%s651_s6] sm:$0xff] %vm211_vm1, %v372_v44 }
 0x18a   : > { %v371_v47 = vpop.xlane.xlu1 %370  ;;  %v368_v48 = vpop.xlane.xlu0 %367 }
 0x18b   : > { %v375_v49 = vadd.f32 %v371_v47, %v355_v45  ;;  %v374_v50 = vadd.f32 %v368_v48, %v354_v46 }
 0x18d   : > { %379 = vst.msk [vmem:[%s651_s6 + $0x18] sm:$0xff] %vm211_vm1, %v375_v49  ;;  %378 = vst.msk [vmem:[%s651_s6 + $0x10] sm:$0xff] %vm211_vm1, %v374_v50 }
 0x18e PF: > { %s14_s14 = sadd.s32 1, %s583_s14   ;;  %s714_s12 = smov %s579_s13 }
 0x18f   : > { %p11_p5 = scmp.ge.s32.totalorder %s14_s14, 4   ;;  %s715_s13 = smov %s717_s15 }
 0x191   :  { %13 = sbr.rel (!%p11_p5) target bundleno = 2 (0x2), region = 74 }

</bundles_post_ra>
